<compile_context>
chip_gen: v5e
topology: v5e:2x2
jax: 0.10.0
libtpu: 0.0.40
codegen_flags: <defaults>
</compile_context>

<pallas_src>
import jax
import jax.numpy as jnp
from jax import lax
from jax.experimental import pallas as pl
from jax.experimental.pallas import tpu as pltpu

LANES = 128
SUBLANES = 8
NQ = 5  # Sx, Sy, Sxx, Syy, Sxy


def _cdiv(a, b):
    return -(-a // b)


def _round_up(v, m):
    return _cdiv(v, m) * m


def _vmem_capacity_bytes():
    try:
        return int(pltpu.get_tpu_info().vmem_capacity_bytes)
    except Exception:
        return 64 * 1024 * 1024  # conservative default (v7x per-TC VMEM)


def _plan(rows, itemsize_min, itemsize_max, vmem_cap):
    """Pick (block rows, #blocks, #partial streams, steps/stream, chunk rows)."""
    # Chunk = one packed-sublane-tile-aligned slab: 8 rows f32, 16 rows bf16,
    # 32 rows int8/fp8, so every dynamic chunk slice is tile aligned.
    ch = SUBLANES * max(1, 4 // itemsize_min)
    # ~1/16 of VMEM per input per pipeline buffer: 2 inputs x 2 buffers stay
    # under ~1/4 of VMEM (4 MiB blocks on v7x's 64 MiB, 8 MiB on v5e/v6e).
    target_bytes = max(vmem_cap // 16, 1 << 20)
    tb_cap = max(ch, (target_bytes // (LANES * itemsize_max)) // ch * ch)
    tb = min(tb_cap, _round_up(rows, ch))
    nb = _cdiv(rows, tb)
    npart = 1
    if nb >= 2:
        if nb % 2 == 0:
            npart = 2
        else:
            # Shrink the block a little so the block count becomes even and
            # the two partial-sum streams split exactly (no wasted DMA).
            tb2 = _round_up(_cdiv(rows, nb + 1), ch)
            nb2 = _cdiv(rows, tb2)
            if nb2 >= 2 and nb2 % 2 == 0:
                tb, nb, npart = tb2, nb2, 2
    spc = nb // npart
    return tb, nb, npart, spc, ch


def _make_kernel(tb, rows, num_blocks, spc, ch):
    """Fused raw-moment kernel; all sizes are closed over statically."""
    has_tail = (rows % tb) != 0
    nchunks = tb // ch
    unroll = 8 if nchunks >= 8 else nchunks

    def fold8(v):
        # (ch, 128) -> (8, 128) with pure VPU adds (identity for f32 chunks).
        if ch == SUBLANES:
            return v
        return jnp.sum(v.reshape(ch // SUBLANES, SUBLANES, LANES), axis=0)

    def kernel(x_ref, y_ref, acc_ref):
        c = pl.program_id(0)          # partial-sum stream (megacore split)
        s = pl.program_id(1)          # step within this stream
        block = c * spc + s           # global block index (always < num_blocks)

        @pl.when(s == 0)
        def _():
            acc_ref[...] = jnp.zeros_like(acc_ref)

        def run(masked):
            row0 = block * tb

            def chunk(i, carry):
                sx, sy, sxx, syy, sxy = carry
                r0 = pl.multiple_of(i * ch, ch)
                xc = x_ref[pl.ds(r0, ch), :].astype(jnp.float32)
                yc = y_ref[pl.ds(r0, ch), :].astype(jnp.float32)
                if masked:
                    ridx = row0 + r0 + lax.broadcasted_iota(
                        jnp.int32, (ch, LANES), 0)
                    valid = ridx < rows
                    xc = jnp.where(valid, xc, 0.0)
                    yc = jnp.where(valid, yc, 0.0)
                return (sx + fold8(xc),
                        sy + fold8(yc),
                        sxx + fold8(xc * xc),
                        syy + fold8(yc * yc),
                        sxy + fold8(xc * yc))

            init = tuple(acc_ref[0, q] for q in range(NQ))
            out = lax.fori_loop(0, nchunks, chunk, init, unroll=unroll)
            for q in range(NQ):
                acc_ref[0, q] = out[q]

        if not has_tail:
            run(masked=False)            # every block is fully valid
        else:
            @pl.when(block < num_blocks - 1)
            def _():
                run(masked=False)

            @pl.when(block == num_blocks - 1)   # only the last block is ragged
            def _():
                run(masked=True)

    return kernel


def ic_loss(tensor1, tensor2):
    assert tensor1.shape == tensor2.shape, "ICLoss expects same-shaped inputs"
    n = int(tensor1.size)                       # static at trace time
    assert n > 0, "ICLoss needs a non-empty tensor"

    x = jnp.ravel(tensor1)
    y = jnp.ravel(tensor2)

    # View the flat stream as (rows, 128).  When n % 128 == 0 this is a pure
    # metadata reshape (no copy).  Otherwise pad with < 128 zeros; zeros are
    # harmless for raw moments since we divide by the true n.  (Only this rare
    # ragged case pays a copy; a 1D/manual-DMA path could remove it too.)
    pad = (-n) % LANES
    if pad:
        x = jnp.pad(x, (0, pad))
        y = jnp.pad(y, (0, pad))
    rows = (n + pad) // LANES
    x2 = x.reshape(rows, LANES)
    y2 = y.reshape(rows, LANES)

    isz1 = jnp.dtype(tensor1.dtype).itemsize
    isz2 = jnp.dtype(tensor2.dtype).itemsize
    vmem_cap = _vmem_capacity_bytes()
    tb, num_blocks, npart, spc, ch = _plan(
        rows, min(isz1, isz2), max(isz1, isz2), vmem_cap)

    tile_spec = pl.BlockSpec((tb, LANES), lambda c, s: (c * spc + s, 0))
    acc_spec = pl.BlockSpec((1, NQ, SUBLANES, LANES), lambda c, s: (c, 0, 0, 0))

    partials = pl.pallas_call(
        _make_kernel(tb, rows, num_blocks, spc, ch),
        out_shape=jax.ShapeDtypeStruct((npart, NQ, SUBLANES, LANES), jnp.float32),
        grid_spec=pltpu.PrefetchScalarGridSpec(
            num_scalar_prefetch=0,
            grid=(npart, spc),
            in_specs=[tile_spec, tile_spec],
            out_specs=acc_spec),
        compiler_params=pltpu.CompilerParams(
            dimension_semantics=("parallel", "arbitrary"),
            vmem_limit_bytes=min(vmem_cap // 2, 128 * 1024 * 1024)),
    )(x2, y2)

    # Tiny epilogue: combine per-stream vreg-shaped partials and form -corr.
    nf = jnp.float32(n)
    sums = jnp.sum(partials, axis=(0, 2, 3))          # (5,)
    sx, sy, sxx, syy, sxy = (sums[i] for i in range(NQ))
    cov = sxy - sx * sy / nf
    # Raw-moment variances can round slightly negative; clamp keeps sqrt real.
    v1 = jnp.maximum(sxx - sx * sx / nf, 0.0)
    v2 = jnp.maximum(syy - sy * sy / nf, 0.0)
    corr = cov / (jnp.sqrt(v1) * jnp.sqrt(v2))
    return -corr


ic_loss_jit = jax.jit(ic_loss)


def _ref_ic_loss(t1, t2):
    t1 = t1.astype(jnp.float32)
    t2 = t2.astype(jnp.float32)
    d1 = t1 - jnp.mean(t1)
    d2 = t2 - jnp.mean(t2)
    return -(jnp.sum(d1 * d2)
             / (jnp.sqrt(jnp.sum(d1 ** 2)) * jnp.sqrt(jnp.sum(d2 ** 2))))


def _check(shape, key, dtype=jnp.float32, tol=1e-4):
    k1, k2 = jax.random.split(key)
    pred = jax.random.normal(k1, shape, dtype=jnp.float32)
    target = 0.7 * pred + 0.3 * jax.random.normal(k2, shape, dtype=jnp.float32)
    pred = pred.astype(dtype)
    target = target.astype(dtype)
    loss = jax.block_until_ready(ic_loss_jit(pred, target))
    ref = jax.block_until_ready(_ref_ic_loss(pred, target))
    assert jnp.allclose(loss, ref, rtol=tol, atol=tol), (shape, dtype, loss, ref)


if __name__ == "__main__":
    key = jax.random.PRNGKey(0)
    keys = jax.random.split(key, 6)

    # Primary case (NCHW-like prediction/target tensors), per the module spec.
    _check((2, 4, 16, 16), keys[0], tol=5e-5)

    # Extra coverage of the static tiling paths:
    _check((3, 5, 7), keys[1])            # n % 128 != 0 -> tiny pad + row tail mask
    _check((2, 4, 240, 160), keys[2])     # aligned n, single block, zero-copy view
    _check((9, 2048, 128), keys[3])       # multi-block, 2 streams, ragged last block
    _check((36000, 128), keys[4])         # odd block count -> even-split adjustment
    _check((4, 4, 64, 64), keys[5], dtype=jnp.bfloat16)   # packed-dtype chunk path

    print("KERNEL_OK")
</pallas_src>

<mosaic_0001>
module attributes {stable_mosaic.version = 11 : i64} {
  func.func @kernel(%arg0: i32, %arg1: i32, %arg2: memref<16x128xf32, #tpu.memory_space<vmem>>, %arg3: memref<16x128xf32, #tpu.memory_space<vmem>>, %arg4: memref<1x5x8x128xf32, #tpu.memory_space<vmem>>) attributes {dimension_semantics = [#tpu.dimension_semantics<parallel>, #tpu.dimension_semantics<arbitrary>], iteration_bounds = array<i64: 1, 1>, scalar_prefetch = 0 : i64, scratch_operands = 0 : i64, tpu.core_type = #tpu.core_type<tc>, window_params = [{transform_indices = @transform_0, window_bounds = array<i64: 16, 128>}, {transform_indices = @transform_1, window_bounds = array<i64: 16, 128>}, {transform_indices = @transform_2, window_bounds = array<i64: 1, 5, 8, 128>}]} {
    %c0_i32 = arith.constant 0 : i32
    %0 = arith.cmpi eq, %arg1, %c0_i32 : i32
    %1 = arith.extui %0 : i1 to i32
    %c0_i32_0 = arith.constant 0 : i32
    %2 = arith.cmpi ne, %1, %c0_i32_0 : i32
    scf.if %2 {
      %cst = arith.constant 0.000000e+00 : f32
      %56 = vector.broadcast %cst : f32 to vector<1x5x8x128xf32>
      %c0_42 = arith.constant 0 : index
      %c0_43 = arith.constant 0 : index
      %c0_44 = arith.constant 0 : index
      %c0_45 = arith.constant 0 : index
      %57 = vector.load %arg4[%c0_42, %c0_43, %c0_44, %c0_45] : memref<1x5x8x128xf32, #tpu.memory_space<vmem>>, vector<1x5x8x128xf32>
      tpu.vector_store %arg4[%c0_42, %c0_43, %c0_44, %c0_45], %56 {strides = array<i32>} : memref<1x5x8x128xf32, #tpu.memory_space<vmem>>, vector<1x5x8x128xf32>,
    } else {
    }
    %c0 = arith.constant 0 : index
    %c0_1 = arith.constant 0 : index
    %c0_2 = arith.constant 0 : index
    %c0_3 = arith.constant 0 : index
    %3 = vector.load %arg4[%c0, %c0_1, %c0_2, %c0_3] : memref<1x5x8x128xf32, #tpu.memory_space<vmem>>, vector<1x1x8x128xf32>
    %4 = vector.shape_cast %3 : vector<1x1x8x128xf32> to vector<8x128xf32>
    %c0_4 = arith.constant 0 : index
    %c1 = arith.constant 1 : index
    %c0_5 = arith.constant 0 : index
    %c0_6 = arith.constant 0 : index
    %5 = vector.load %arg4[%c0_4, %c1, %c0_5, %c0_6] : memref<1x5x8x128xf32, #tpu.memory_space<vmem>>, vector<1x1x8x128xf32>
    %6 = vector.shape_cast %5 : vector<1x1x8x128xf32> to vector<8x128xf32>
    %c0_7 = arith.constant 0 : index
    %c2 = arith.constant 2 : index
    %c0_8 = arith.constant 0 : index
    %c0_9 = arith.constant 0 : index
    %7 = vector.load %arg4[%c0_7, %c2, %c0_8, %c0_9] : memref<1x5x8x128xf32, #tpu.memory_space<vmem>>, vector<1x1x8x128xf32>
    %8 = vector.shape_cast %7 : vector<1x1x8x128xf32> to vector<8x128xf32>
    %c0_10 = arith.constant 0 : index
    %c3 = arith.constant 3 : index
    %c0_11 = arith.constant 0 : index
    %c0_12 = arith.constant 0 : index
    %9 = vector.load %arg4[%c0_10, %c3, %c0_11, %c0_12] : memref<1x5x8x128xf32, #tpu.memory_space<vmem>>, vector<1x1x8x128xf32>
    %10 = vector.shape_cast %9 : vector<1x1x8x128xf32> to vector<8x128xf32>
    %c0_13 = arith.constant 0 : index
    %c4 = arith.constant 4 : index
    %c0_14 = arith.constant 0 : index
    %c0_15 = arith.constant 0 : index
    %11 = vector.load %arg4[%c0_13, %c4, %c0_14, %c0_15] : memref<1x5x8x128xf32, #tpu.memory_space<vmem>>, vector<1x1x8x128xf32>
    %12 = vector.shape_cast %11 : vector<1x1x8x128xf32> to vector<8x128xf32>
    %c0_i32_16 = arith.constant 0 : i32
    %c8_i32 = arith.constant 8 : i32
    %13 = arith.muli %c0_i32_16, %c8_i32 : i32
    %14 = tpu.assume_multiple %13, 8 : i32
    %15 = arith.index_cast %14 : i32 to index
    %c0_17 = arith.constant 0 : index
    %16 = vector.load %arg2[%15, %c0_17] : memref<16x128xf32, #tpu.memory_space<vmem>>, vector<8x128xf32>
    %17 = arith.index_cast %14 : i32 to index
    %c0_18 = arith.constant 0 : index
    %18 = vector.load %arg3[%17, %c0_18] : memref<16x128xf32, #tpu.memory_space<vmem>>, vector<8x128xf32>
    %19 = arith.addf %4, %16 : vector<8x128xf32>
    %20 = arith.addf %6, %18 : vector<8x128xf32>
    %21 = arith.mulf %16, %16 : vector<8x128xf32>
    %22 = arith.addf %8, %21 : vector<8x128xf32>
    %23 = arith.mulf %18, %18 : vector<8x128xf32>
    %24 = arith.addf %10, %23 : vector<8x128xf32>
    %25 = arith.mulf %16, %18 : vector<8x128xf32>
    %26 = arith.addf %12, %25 : vector<8x128xf32>
    %c1_i32 = arith.constant 1 : i32
    %c8_i32_19 = arith.constant 8 : i32
    %27 = arith.muli %c1_i32, %c8_i32_19 : i32
    %28 = tpu.assume_multiple %27, 8 : i32
    %29 = arith.index_cast %28 : i32 to index
    %c0_20 = arith.constant 0 : index
    %30 = vector.load %arg2[%29, %c0_20] : memref<16x128xf32, #tpu.memory_space<vmem>>, vector<8x128xf32>
    %31 = arith.index_cast %28 : i32 to index
    %c0_21 = arith.constant 0 : index
    %32 = vector.load %arg3[%31, %c0_21] : memref<16x128xf32, #tpu.memory_space<vmem>>, vector<8x128xf32>
    %33 = arith.addf %19, %30 : vector<8x128xf32>
    %34 = arith.addf %20, %32 : vector<8x128xf32>
    %35 = arith.mulf %30, %30 : vector<8x128xf32>
    %36 = arith.addf %22, %35 : vector<8x128xf32>
    %37 = arith.mulf %32, %32 : vector<8x128xf32>
    %38 = arith.addf %24, %37 : vector<8x128xf32>
    %39 = arith.mulf %30, %32 : vector<8x128xf32>
    %40 = arith.addf %26, %39 : vector<8x128xf32>
    %c2_i32 = arith.constant 2 : i32
    %c0_22 = arith.constant 0 : index
    %c0_23 = arith.constant 0 : index
    %c0_24 = arith.constant 0 : index
    %c0_25 = arith.constant 0 : index
    %41 = vector.load %arg4[%c0_22, %c0_23, %c0_24, %c0_25] : memref<1x5x8x128xf32, #tpu.memory_space<vmem>>, vector<1x1x8x128xf32>
    %42 = vector.shape_cast %41 : vector<1x1x8x128xf32> to vector<8x128xf32>
    %43 = vector.shape_cast %33 : vector<8x128xf32> to vector<1x1x8x128xf32>
    tpu.vector_store %arg4[%c0_22, %c0_23, %c0_24, %c0_25], %43 {strides = array<i32>} : memref<1x5x8x128xf32, #tpu.memory_space<vmem>>, vector<1x1x8x128xf32>,
    %c0_26 = arith.constant 0 : index
    %c1_27 = arith.constant 1 : index
    %c0_28 = arith.constant 0 : index
    %c0_29 = arith.constant 0 : index
    %44 = vector.load %arg4[%c0_26, %c1_27, %c0_28, %c0_29] : memref<1x5x8x128xf32, #tpu.memory_space<vmem>>, vector<1x1x8x128xf32>
    %45 = vector.shape_cast %44 : vector<1x1x8x128xf32> to vector<8x128xf32>
    %46 = vector.shape_cast %34 : vector<8x128xf32> to vector<1x1x8x128xf32>
    tpu.vector_store %arg4[%c0_26, %c1_27, %c0_28, %c0_29], %46 {strides = array<i32>} : memref<1x5x8x128xf32, #tpu.memory_space<vmem>>, vector<1x1x8x128xf32>,
    %c0_30 = arith.constant 0 : index
    %c2_31 = arith.constant 2 : index
    %c0_32 = arith.constant 0 : index
    %c0_33 = arith.constant 0 : index
    %47 = vector.load %arg4[%c0_30, %c2_31, %c0_32, %c0_33] : memref<1x5x8x128xf32, #tpu.memory_space<vmem>>, vector<1x1x8x128xf32>
    %48 = vector.shape_cast %47 : vector<1x1x8x128xf32> to vector<8x128xf32>
    %49 = vector.shape_cast %36 : vector<8x128xf32> to vector<1x1x8x128xf32>
    tpu.vector_store %arg4[%c0_30, %c2_31, %c0_32, %c0_33], %49 {strides = array<i32>} : memref<1x5x8x128xf32, #tpu.memory_space<vmem>>, vector<1x1x8x128xf32>,
    %c0_34 = arith.constant 0 : index
    %c3_35 = arith.constant 3 : index
    %c0_36 = arith.constant 0 : index
    %c0_37 = arith.constant 0 : index
    %50 = vector.load %arg4[%c0_34, %c3_35, %c0_36, %c0_37] : memref<1x5x8x128xf32, #tpu.memory_space<vmem>>, vector<1x1x8x128xf32>
    %51 = vector.shape_cast %50 : vector<1x1x8x128xf32> to vector<8x128xf32>
    %52 = vector.shape_cast %38 : vector<8x128xf32> to vector<1x1x8x128xf32>
    tpu.vector_store %arg4[%c0_34, %c3_35, %c0_36, %c0_37], %52 {strides = array<i32>} : memref<1x5x8x128xf32, #tpu.memory_space<vmem>>, vector<1x1x8x128xf32>,
    %c0_38 = arith.constant 0 : index
    %c4_39 = arith.constant 4 : index
    %c0_40 = arith.constant 0 : index
    %c0_41 = arith.constant 0 : index
    %53 = vector.load %arg4[%c0_38, %c4_39, %c0_40, %c0_41] : memref<1x5x8x128xf32, #tpu.memory_space<vmem>>, vector<1x1x8x128xf32>
    %54 = vector.shape_cast %53 : vector<1x1x8x128xf32> to vector<8x128xf32>
    %55 = vector.shape_cast %40 : vector<8x128xf32> to vector<1x1x8x128xf32>
    tpu.vector_store %arg4[%c0_38, %c4_39, %c0_40, %c0_41], %55 {strides = array<i32>} : memref<1x5x8x128xf32, #tpu.memory_space<vmem>>, vector<1x1x8x128xf32>,
    return
  }
  func.func @transform_0(%arg0: i32, %arg1: i32) -> (i32, i32) {
    %c1_i32 = arith.constant 1 : i32
    %0 = arith.muli %arg0, %c1_i32 : i32
    %1 = arith.addi %0, %arg1 : i32
    %c0_i32 = arith.constant 0 : i32
    %c0_i32_0 = arith.constant 0 : i32
    return %1, %c0_i32 : i32, i32
  }
  func.func @transform_1(%arg0: i32, %arg1: i32) -> (i32, i32) {
    %c1_i32 = arith.constant 1 : i32
    %0 = arith.muli %arg0, %c1_i32 : i32
    %1 = arith.addi %0, %arg1 : i32
    %c0_i32 = arith.constant 0 : i32
    %c0_i32_0 = arith.constant 0 : i32
    return %1, %c0_i32 : i32, i32
  }
  func.func @transform_2(%arg0: i32, %arg1: i32) -> (i32, i32, i32, i32) {
    %c0_i32 = arith.constant 0 : i32
    %c0_i32_0 = arith.constant 0 : i32
    %c0_i32_1 = arith.constant 0 : i32
    %c0_i32_2 = arith.constant 0 : i32
    return %arg0, %c0_i32, %c0_i32_0, %c0_i32_1 : i32, i32, i32, i32
  }
}

</mosaic_0001>

<bundles_post_ra>
// kernel: ic_loss.1
= control target key start
LH: loop header
LB: loop body
LE: loop exit
PB: predicated region body
PF: predicated region fallthrough
CT: control target
= control target key end

     0   :  { %s169_s0 = inlined_call_operand.vmem [shape: f32[16,128], index: 0, kind: input, shape index: {}]   ;;  %s170_s1 = inlined_call_operand.vmem [shape: f32[16,128], index: 1, kind: input, shape index: {}]   ;;  %s171_s2 = inlined_call_operand.vmem [shape: f32[1,5,8,128], index: 2, kind: output, shape index: {}]  }
   0x1   :  { %v73_v0 = vld [vmem:[%s169_s0] sm:$0xff]  ;;  %v120_v1 = vld [vmem:[%s169_s0 + $0x8] sm:$0xff] }
   0x2   :  { %v74_v2 = vld [vmem:[%s170_s1] sm:$0xff]  ;;  %v121_v3 = vld [vmem:[%s170_s1 + $0x8] sm:$0xff]  ;;  %v77_v4 = vmul.f32 %v73_v0, %v73_v0  ;;  %v89_v5 = vmul.f32 %v120_v1, %v120_v1  ;;  %v87_v10 = vadd.f32 %v120_v1, %v73_v0 }
   0x3   :  { %v79_v6 = vmul.f32 %v74_v2, %v74_v2  ;;  %v91_v7 = vmul.f32 %v121_v3, %v121_v3  ;;  %v81_v8 = vmul.f32 %v74_v2, %v73_v0  ;;  %v93_v9 = vmul.f32 %v121_v3, %v120_v1 }
   0x4   :  { %v88_v11 = vadd.f32 %v121_v3, %v74_v2  ;;  %95 = vst [vmem:[%s171_s2] sm:$0xff] %v87_v10  ;;  %v90_v12 = vadd.f32 %v89_v5, %v77_v4 }
   0x5   :  { %v92_v13 = vadd.f32 %v91_v7, %v79_v6  ;;  %v94_v14 = vadd.f32 %v93_v9, %v81_v8 }
   0x6   :  { %122 = vst [vmem:[%s171_s2 + $0x8] sm:$0xff] %v88_v11 }
   0x7   :  { %123 = vst [vmem:[%s171_s2 + $0x10] sm:$0xff] %v90_v12 }
   0x8   :  { %124 = vst [vmem:[%s171_s2 + $0x18] sm:$0xff] %v92_v13 }
   0x9   :  { %125 = vst [vmem:[%s171_s2 + $0x20] sm:$0xff] %v94_v14 }

</bundles_post_ra>
